<compile_context>
chip_gen: v7x
topology: tpu7x:2x2x1
jax: 0.10.0
libtpu: 0.0.40
codegen_flags: <defaults>
</compile_context>

<pallas_src>
import jax
import jax.numpy as jnp
from jax.experimental import pallas as pl
from jax.experimental.pallas import tpu as pltpu


def _round_up(x: int, m: int) -> int:
    return (x + m - 1) // m * m


def _yolos_output_kernel(h_ref, w_ref, b_ref, res_ref, o_ref):
    # nn.Dropout is identity in eval mode.
    # TODO(synk): train-mode dropout (pltpu.prng_random_bits mask) not emitted.
    # In-kernel bf16 cast of the activation tile (VPU cast hides under DMA).
    h = h_ref[...].astype(jnp.bfloat16)
    acc = jnp.dot(h, w_ref[...], preferred_element_type=jnp.float32)
    out = acc + b_ref[...].astype(jnp.float32) + res_ref[...].astype(jnp.float32)
    o_ref[...] = out.astype(o_ref.dtype)


def yolos_output_forward(hidden_states, input_tensor, w_dense, b_dense, *, tm: int = 512):
    """hidden_states: (B, S, intermediate), input_tensor: (B, S, hidden).

    w_dense: (intermediate, hidden), b_dense: (hidden,)
    Returns (B, S, hidden), matching nn.Linear + dropout(eval) + residual.
    """
    B, S, K = hidden_states.shape
    N = input_tensor.shape[-1]
    assert w_dense.shape == (K, N)
    out_dtype = hidden_states.dtype
    M = B * S

    h2 = hidden_states.reshape(M, K)        # stays f32 in HBM; cast in-kernel
    r2 = input_tensor.reshape(M, N)
    w2 = w_dense.astype(jnp.bfloat16)       # small, kept VMEM-resident
    b2 = b_dense.reshape(1, N)

    # Lane-dense output: pad the feature axis to a multiple of 128.  This is a
    # no-op for real YOLOS hidden sizes (e.g. 768); only tiny-N configs pay it.
    N_pad = _round_up(N, 128)
    if N_pad != N:
        w2 = jnp.pad(w2, ((0, 0), (0, N_pad - N)))
        b2 = jnp.pad(b2, ((0, 0), (0, N_pad - N)))
        r2 = jnp.pad(r2, ((0, 0), (0, N_pad - N)))

    # M tiling: multiple of 16, no M padding (Pallas masks the ragged last
    # tile).  Split into >= 2 tiles when M allows so both v7x TCs get work.
    tm_eff = min(tm, _round_up(M, 16))
    if tm_eff >= M and M >= 32:
        tm_eff = _round_up(pl.cdiv(M, 2), 16)
    grid_m = pl.cdiv(M, tm_eff)

    cost = pl.CostEstimate(
        flops=2 * M * K * N_pad,
        transcendentals=0,
        bytes_accessed=(
            h2.size * h2.dtype.itemsize
            + w2.size * w2.dtype.itemsize
            + b2.size * b2.dtype.itemsize
            + r2.size * r2.dtype.itemsize
            + M * N_pad * jnp.dtype(out_dtype).itemsize
        ),
    )

    out = pl.pallas_call(
        _yolos_output_kernel,
        out_shape=jax.ShapeDtypeStruct((M, N_pad), out_dtype),
        grid_spec=pltpu.PrefetchScalarGridSpec(
            num_scalar_prefetch=0,
            grid=(grid_m,),
            in_specs=[
                pl.BlockSpec((tm_eff, K), lambda i: (i, 0)),      # activations, full K
                pl.BlockSpec((K, N_pad), lambda i: (0, 0)),       # weight, resident
                pl.BlockSpec((1, N_pad), lambda i: (0, 0)),       # bias, resident
                pl.BlockSpec((tm_eff, N_pad), lambda i: (i, 0)),  # residual
            ],
            out_specs=pl.BlockSpec((tm_eff, N_pad), lambda i: (i, 0)),
        ),
        compiler_params=pltpu.CompilerParams(
            dimension_semantics=("parallel",),
            vmem_limit_bytes=64 * 1024 * 1024,
        ),
        cost_estimate=cost,
    )(h2, w2, b2, r2)

    if N_pad != N:
        out = out[:, :N]
    return out.reshape(B, S, N)


if __name__ == "__main__":
    # Small config consistent with the module:
    #   config.intermediate_size = 256, config.hidden_size = 32
    batch, seq = 2, 8
    intermediate_size, hidden_size = 256, 32

    key = jax.random.PRNGKey(0)
    k_h, k_r, k_w, k_b = jax.random.split(key, 4)

    hidden_states = jax.random.normal(k_h, (batch, seq, intermediate_size), jnp.float32)
    input_tensor = jax.random.normal(k_r, (batch, seq, hidden_size), jnp.float32)

    # Deterministic parameter init (shapes from nn.Linear(intermediate, hidden)).
    w_dense = jax.random.normal(k_w, (intermediate_size, hidden_size), jnp.float32) * 0.02
    b_dense = jax.random.normal(k_b, (hidden_size,), jnp.float32) * 0.02

    out = yolos_output_forward(hidden_states, input_tensor, w_dense, b_dense)
    out = jax.block_until_ready(out)
    assert out.shape == (batch, seq, hidden_size)

    # Reference with the same bf16 matmul operands / f32 accumulation (tight check).
    ref_bf16 = (
        jnp.einsum(
            "bsk,kn->bsn",
            hidden_states.astype(jnp.bfloat16),
            w_dense.astype(jnp.bfloat16),
            preferred_element_type=jnp.float32,
        )
        + b_dense
        + input_tensor
    )
    assert jnp.allclose(out, ref_bf16, atol=1e-3, rtol=1e-3)

    # Full-precision reference (loose check — bounds the bf16 quantization error).
    ref_f32 = jnp.einsum("bsk,kn->bsn", hidden_states, w_dense) + b_dense + input_tensor
    assert jnp.allclose(out, ref_f32, atol=2e-2, rtol=2e-2)

    print("KERNEL_OK")
</pallas_src>

<mosaic_0001>
module attributes {stable_mosaic.version = 11 : i64} {
  func.func @_yolos_output_kernel(%arg0: i32, %arg1: memref<16x256xf32, #tpu.memory_space<vmem>>, %arg2: memref<256x128xbf16, #tpu.memory_space<vmem>>, %arg3: memref<1x128xf32, #tpu.memory_space<vmem>>, %arg4: memref<16x128xf32, #tpu.memory_space<vmem>>, %arg5: memref<16x128xf32, #tpu.memory_space<vmem>>) attributes {dimension_semantics = [#tpu.dimension_semantics<parallel>], iteration_bounds = array<i64: 1>, scalar_prefetch = 0 : i64, scratch_operands = 0 : i64, tpu.core_type = #tpu.core_type<tc>, window_params = [{transform_indices = @transform_0, window_bounds = array<i64: 16, 256>}, {pipeline_mode = #tpu.pipeline_mode<synchronous>, transform_indices = @transform_1, window_bounds = array<i64: 256, 128>}, {pipeline_mode = #tpu.pipeline_mode<synchronous>, transform_indices = @transform_2, window_bounds = array<i64: 1, 128>}, {transform_indices = @transform_3, window_bounds = array<i64: 16, 128>}, {transform_indices = @transform_4, window_bounds = array<i64: 16, 128>}]} {
    %c0 = arith.constant 0 : index
    %c0_0 = arith.constant 0 : index
    %0 = vector.load %arg1[%c0, %c0_0] : memref<16x256xf32, #tpu.memory_space<vmem>>, vector<16x256xf32>
    %1 = arith.truncf %0 : vector<16x256xf32> to vector<16x256xbf16>
    %c0_1 = arith.constant 0 : index
    %c0_2 = arith.constant 0 : index
    %2 = vector.load %arg2[%c0_1, %c0_2] : memref<256x128xbf16, #tpu.memory_space<vmem>>, vector<256x128xbf16>
    %cst = arith.constant dense<0.000000e+00> : vector<16x128xf32>
    %3 = tpu.matmul %1, %2, %cst {dimension_numbers = #tpu.dot_dimension_numbers<[1], [0], [0], [1], [0, 0, 1, 1], [], []>} : vector<16x256xbf16>, vector<256x128xbf16>, vector<16x128xf32> -> vector<16x128xf32>
    %c0_3 = arith.constant 0 : index
    %c0_4 = arith.constant 0 : index
    %4 = vector.load %arg3[%c0_3, %c0_4] : memref<1x128xf32, #tpu.memory_space<vmem>>, vector<1x128xf32>
    %5 = vector.broadcast %4 : vector<1x128xf32> to vector<16x128xf32>
    %6 = arith.addf %3, %5 : vector<16x128xf32>
    %c0_5 = arith.constant 0 : index
    %c0_6 = arith.constant 0 : index
    %7 = vector.load %arg4[%c0_5, %c0_6] : memref<16x128xf32, #tpu.memory_space<vmem>>, vector<16x128xf32>
    %8 = arith.addf %6, %7 : vector<16x128xf32>
    %c0_7 = arith.constant 0 : index
    %c0_8 = arith.constant 0 : index
    %9 = vector.load %arg5[%c0_7, %c0_8] : memref<16x128xf32, #tpu.memory_space<vmem>>, vector<16x128xf32>
    tpu.vector_store %arg5[%c0_7, %c0_8], %8 {strides = array<i32>} : memref<16x128xf32, #tpu.memory_space<vmem>>, vector<16x128xf32>,
    return
  }
  func.func @transform_0(%arg0: i32) -> (i32, i32) {
    %c0_i32 = arith.constant 0 : i32
    %c0_i32_0 = arith.constant 0 : i32
    return %arg0, %c0_i32 : i32, i32
  }
  func.func @transform_1(%arg0: i32) -> (i32, i32) {
    %c0_i32 = arith.constant 0 : i32
    %c0_i32_0 = arith.constant 0 : i32
    %c0_i32_1 = arith.constant 0 : i32
    return %c0_i32, %c0_i32_0 : i32, i32
  }
  func.func @transform_2(%arg0: i32) -> (i32, i32) {
    %c0_i32 = arith.constant 0 : i32
    %c0_i32_0 = arith.constant 0 : i32
    %c0_i32_1 = arith.constant 0 : i32
    return %c0_i32, %c0_i32_0 : i32, i32
  }
  func.func @transform_3(%arg0: i32) -> (i32, i32) {
    %c0_i32 = arith.constant 0 : i32
    %c0_i32_0 = arith.constant 0 : i32
    return %arg0, %c0_i32 : i32, i32
  }
  func.func @transform_4(%arg0: i32) -> (i32, i32) {
    %c0_i32 = arith.constant 0 : i32
    %c0_i32_0 = arith.constant 0 : i32
    return %arg0, %c0_i32 : i32, i32
  }
}

</mosaic_0001>

<bundles_post_ra>
// kernel: tpu_custom_call.1
= control target key start
LH: loop header
LB: loop body
LE: loop exit
PB: predicated region body
PF: predicated region fallthrough
CT: control target
= control target key end

     0   :  { %9 = vsyncpa [#allocation3], 0  ;;  %s572_s0 = inlined_call_operand.hbm [shape: f32[16,256], index: 0, kind: input, shape index: {}]   ;;  %s573_s1 = inlined_call_operand.hbm [shape: bf16[256,128], index: 1, kind: input, shape index: {}]   ;;  %s574_s2 = inlined_call_operand.hbm [shape: f32[1,128], index: 2, kind: input, shape index: {}]   ;;  %s575_s3 = inlined_call_operand.hbm [shape: f32[16,128], index: 3, kind: input, shape index: {}]   ;;  %s576_s4 = inlined_call_operand.hbm [shape: f32[16,128], index: 4, kind: output, shape index: {}]  }
   0x1   :  { %10 = vsyncpa [#allocation6], 0 }
   0x2   :  { %11 = vsyncpa [#allocation9], 0 }
   0x3   :  { %12 = vsyncpa [#allocation4], 0  ;;  %s463_s15 = smov [#allocation5]   ;;  %s345_s19 = scalar_lea.hbm %s573_s1, 2048 }
   0x4   :  { %s30_s16 = sshll.u32 %s463_s15, 4  ;;  %p346_p0 = scmp.ne.s32.totalorder %s573_s1, %s345_s19  ;;  %s31_s16 = int_to_ptr.vmem [resolvable:$true] %s30_s16 }
   0x5   :  { %p349_p1 = scmp.lt.u32.totalorder %s345_s19, %s573_s1 }
   0x7   :  { %p351_p2 = pnand %p349_p1, %p346_p0 }
   0x9   :  { %354 = shalt.err (!%p351_p2)
}
   0xa   :  { %s355_s24 = scalar_lea.vmem %s31_s16, 2048  ;;  %p360_p4 = scmp.lt.s32.totalorder %s31_s16, %s31_s16 }
   0xb   :  { %p356_p3 = scmp.ne.s32.totalorder %s31_s16, %s355_s24  ;;  %p361_p5 = scmp.lt.s32.totalorder %s355_s24, %s355_s24 }
   0xd   :  { %p362_p6 = por %p361_p5, %p360_p4 }
   0xf   :  { %p363_p7 = pnand %p362_p6, %p356_p3 }
  0x11   :  { %366 = shalt.err (!%p363_p7)
}
  0x12   :  { %s464_s25 = smov 64   ;;  %s465_s26 = smov 4  }
  0x13   :  { %36 = dma.hbm_to_vmem [thread:$0]  %s573_s1, 2048, %s31_s16, [#allocation6], %s464_s25, %s464_s25, %s465_s26  }
  0x14   :  { %s466_s29 = smov [#allocation2]   ;;  %s367_s7 = scalar_lea.hbm %s572_s0, 512 }
  0x15   :  { %s18_s30 = sshll.u32 %s466_s29, 4  ;;  %p368_p8 = scmp.ne.s32.totalorder %s572_s0, %s367_s7  ;;  %s19_s30 = int_to_ptr.vmem [resolvable:$true] %s18_s30 }
  0x16   :  { %p371_p9 = scmp.lt.u32.totalorder %s367_s7, %s572_s0 }
  0x18   :  { %p373_p10 = pnand %p371_p9, %p368_p8 }
  0x1a   :  { %376 = shalt.err (!%p373_p10)
}
  0x1b   :  { %s377_s12 = scalar_lea.vmem %s19_s30, 512  ;;  %p382_p12 = scmp.lt.s32.totalorder %s19_s30, %s19_s30 }
  0x1c   :  { %p378_p11 = scmp.ne.s32.totalorder %s19_s30, %s377_s12  ;;  %p383_p13 = scmp.lt.s32.totalorder %s377_s12, %s377_s12 }
  0x1e   :  { %p384_p0 = por %p383_p13, %p382_p12 }
  0x20   :  { %p385_p1 = pnand %p384_p0, %p378_p11 }
  0x22   :  { %388 = shalt.err (!%p385_p1)
}
  0x23   :  { %s467_s1 = smov 256   ;;  %s468_s13 = smov 16  }
  0x24   :  { %24 = dma.hbm_to_vmem [thread:$0]  %s572_s0, 512, %s19_s30, [#allocation3], %s467_s1, %s467_s1, %s468_s13  }
  0x25   :  { %s469_s16 = smov [#allocation7]   ;;  %s470_s18 = smov [#allocation8]  }
  0x26   :  { %s43_s17 = sshll.u32 %s469_s16, 4  ;;  %s52_s19 = sshll.u32 %s470_s18, 4  ;;  %s44_s17 = int_to_ptr.vmem [resolvable:$true] %s43_s17  ;;  %s523_s19 = int_to_ptr.vmem [resolvable:$true] %s52_s19 }
  0x27   :  { %s389_s22 = scalar_lea.hbm %s574_s2, 16 }
  0x28   :  { %p390_p2 = scmp.ne.s32.totalorder %s574_s2, %s389_s22  ;;  %p393_p3 = scmp.lt.u32.totalorder %s389_s22, %s574_s2 }
  0x2a   :  { %p395_p4 = pnand %p393_p3, %p390_p2 }
  0x2c   :  { %398 = shalt.err (!%p395_p4)
}
  0x2d   :  { %s399_s0 = scalar_lea.vmem %s44_s17, 16  ;;  %s403_s27 = scalar_lea.vmem %s44_s17, 32 }
  0x2e   :  { %p400_p5 = scmp.ne.s32.totalorder %s44_s17, %s399_s0  ;;  %p404_p6 = scmp.lt.s32.totalorder %s44_s17, %s44_s17 }
  0x2f   :  { %p405_p7 = scmp.lt.s32.totalorder %s403_s27, %s399_s0 }
  0x31   :  { %p406_p8 = por %p405_p7, %p404_p6 }
  0x33   :  { %p407_p9 = pnand %p406_p8, %p400_p5 }
  0x35   :  { %410 = shalt.err (!%p407_p9)
}
  0x36   :  { %46 = dma.hbm_to_vmem [thread:$0]  %s574_s2, 16, %s44_s17, [#allocation6]  }
  0x37   :  { %s411_s6 = scalar_lea.hbm %s575_s3, 256 }
  0x38   :  { %p412_p10 = scmp.ne.s32.totalorder %s575_s3, %s411_s6  ;;  %p415_p11 = scmp.lt.u32.totalorder %s411_s6, %s575_s3 }
  0x3a   :  { %p417_p12 = pnand %p415_p11, %p412_p10 }
  0x3c   :  { %420 = shalt.err (!%p417_p12)
}
  0x3d   :  { %s421_s11 = scalar_lea.vmem %s523_s19, 256  ;;  %p426_p0 = scmp.lt.s32.totalorder %s523_s19, %s523_s19 }
  0x3e   :  { %p422_p13 = scmp.ne.s32.totalorder %s523_s19, %s421_s11  ;;  %p427_p1 = scmp.lt.s32.totalorder %s421_s11, %s421_s11 }
  0x40   :  { %p428_p2 = por %p427_p1, %p426_p0 }
  0x42   :  { %p429_p3 = pnand %p428_p2, %p422_p13 }
  0x44   :  { %432 = shalt.err (!%p429_p3)
}
  0x45   :  { %s471_s2 = smov 128   ;;  %s472_s12 = smov 8  }
  0x46   :  { %58 = dma.hbm_to_vmem [thread:$0]  %s575_s3, 256, %s523_s19, [#allocation9], %s471_s2, %s471_s2, %s472_s12  }
  0x47   :  { %455 = dma.done.wait [#allocation3], 512  }
  0x48   :  { %456 = vsyncadd [#allocation3], 4294966784 }
  0x49   :  { %457 = dma.done.wait [#allocation6], 2064  }
  0x4a   :  { %458 = vsyncadd [#allocation6], 4294965232 }
  0x4b   :  { %459 = dma.done.wait [#allocation9], 256  }
  0x4c   :  { %460 = vsyncadd [#allocation9], 4294967040  ;;  %v329_v0 = vld [vmem:[#allocation5 + $0x40] sm:$0xff]   ;;  %v331_v2 = vld [vmem:[#allocation5 + $0x48] sm:$0xff]   ;;  %s473_s3 = smov [#allocation10]  }
  0x4d   :  { %v330_v1 = vld [vmem:[#allocation5] sm:$0xff]   ;;  %296 = vmatprep.subr.bf16.mxu0 %v329_v0  ;;  %v332_v3 = vld [vmem:[#allocation5 + $0x8] sm:$0xff]   ;;  %v333_v4 = vld [vmem:[#allocation5 + $0x50] sm:$0xff]   ;;  %s265_s14 = sshll.u32 %s473_s3, 4  ;;  %s266_s14 = int_to_ptr.vmem [resolvable:$true] %s265_s14 }
  0x4e   :  { %297 = vmatpush3.bf16.msra.mxu0 %v330_v1  ;;  %v334_v5 = vld [vmem:[#allocation5 + $0x10] sm:$0xff]   ;;  %v335_v6 = vld [vmem:[#allocation5 + $0x58] sm:$0xff]   ;;  %v337_v8 = vld [vmem:[#allocation5 + $0x60] sm:$0xff]   ;;  %s433_s15 = scalar_lea.vmem %s266_s14, 256  ;;  %p438_p5 = scmp.lt.s32.totalorder %s266_s14, %s266_s14 }
  0x4f   :  { %298 = vmatprep.subr.bf16.mxu0 %v331_v2  ;;  %v336_v7 = vld [vmem:[#allocation5 + $0x18] sm:$0xff]   ;;  %v338_v9 = vld [vmem:[#allocation5 + $0x20] sm:$0xff]   ;;  %v339_v10 = vld [vmem:[#allocation5 + $0x68] sm:$0xff]   ;;  %p434_p4 = scmp.ne.s32.totalorder %s266_s14, %s433_s15  ;;  %p439_p6 = scmp.lt.s32.totalorder %s433_s15, %s433_s15 }
  0x50   :  { %v73_v11 = vld [vmem:[#allocation2 + $0x8] sm:$0xff]  ;;  %v75_v12 = vld [vmem:[#allocation2 + $0x18] sm:$0xff]  ;;  %v341_v15 = vld [vmem:[#allocation5 + $0x70] sm:$0xff]  }
  0x51   :  { %v77_v13 = vpack.c.bf16 %v75_v12, %v73_v11  ;;  %v340_v14 = vld [vmem:[#allocation5 + $0x28] sm:$0xff]   ;;  %v342_v16 = vld [vmem:[#allocation5 + $0x30] sm:$0xff]   ;;  %v343_v17 = vld [vmem:[#allocation5 + $0x78] sm:$0xff]   ;;  %p440_p7 = por %p439_p6, %p438_p5 }
  0x52   :  { %299 = vmatpush3.bf16.msra.mxu0 %v332_v3  ;;  %v344_v18 = vld [vmem:[#allocation5 + $0x38] sm:$0xff]   ;;  %v72_v19 = vld [vmem:[#allocation2] sm:$0xff]  ;;  %v74_v20 = vld [vmem:[#allocation2 + $0x10] sm:$0xff] }
  0x53   :  { %300 = vmatprep.subr.bf16.mxu0 %v333_v4  ;;  %245 = vmatprep.mubr.bf16.mxu0 %v77_v13  ;;  %v76_v21 = vpack.c.bf16 %v74_v20, %v72_v19  ;;  %v279_v23 = vld [vmem:[#allocation7] ss:$0 sm:$0xff]  ;;  %v254_v27 = vld [vmem:[#allocation8] sm:$0xff]  ;;  %v255_v31 = vld [vmem:[#allocation8 + $0x8] sm:$0xff]  ;;  %p441_p8 = pnand %p440_p7, %p434_p4 }
  0x56   :  { %301 = vmatpush3.bf16.msra.mxu0 %v334_v5 }
  0x57   :  { %302 = vmatprep.subr.bf16.mxu0 %v335_v6 }
  0x5a   :  { %303 = vmatpush3.bf16.msra.mxu0 %v336_v7 }
  0x5b   :  { %304 = vmatprep.subr.bf16.mxu0 %v337_v8 }
  0x5e   :  { %305 = vmatpush3.bf16.msra.mxu0 %v338_v9 }
  0x5f   :  { %306 = vmatprep.subr.bf16.mxu0 %v339_v10 }
  0x62   :  { %307 = vmatpush3.bf16.msra.mxu0 %v340_v14 }
  0x63   :  { %308 = vmatprep.subr.bf16.mxu0 %v341_v15 }
  0x66   :  { %309 = vmatpush3.bf16.msra.mxu0 %v342_v16 }
  0x67   :  { %310 = vmatprep.subr.bf16.mxu0 %v343_v17 }
  0x6a   :  { %311 = vmatpush3.bf16.msra.mxu0 %v344_v18 }
  0x6d   :  { %246 = vmatmul.mubr.bf16.vlgmr.msra.gmra.mrb[0].mxu0 %v76_v21 }
 0x140   :  { %v312_v22 = vpop.f32.mrb[0].mxu0 }
 0x141   :  { %v313_v24 = vpop.f32.mrb[1].mxu0 }
 0x142   :  { %v314_v25 = vadd.f32 %v313_v24, %v312_v22  ;;  %v315_v26 = vpop.f32.mrb[2].mxu0 }
 0x143   :  { %v316_v28 = vpop.f32.mrb[3].mxu0 }
 0x144   :  { %v248_v29 = vadd.f32 %v314_v25, %v279_v23  ;;  %v317_v30 = vadd.f32 %v316_v28, %v315_v26 }
 0x146   :  { %v256_v32 = vadd.f32 %v254_v27, %v248_v29  ;;  %v251_v33 = vadd.f32 %v317_v30, %v279_v23 }
 0x148   :  { %258 = vst [vmem:[#allocation10] sm:$0xff] %v256_v32  ;;  %v257_v34 = vadd.f32 %v255_v31, %v251_v33 }
 0x14a   :  { %259 = vst [vmem:[#allocation10 + $0x8] sm:$0xff] %v257_v34 }
 0x14b   :  { %444 = shalt.err (!%p441_p8)
}
 0x14c   :  { %s445_s18 = scalar_lea.hbm %s576_s4, 256 }
 0x14d   :  { %p446_p9 = scmp.ne.s32.totalorder %s576_s4, %s445_s18  ;;  %p449_p10 = scmp.lt.u32.totalorder %s445_s18, %s576_s4 }
 0x14f   :  { %p451_p11 = pnand %p449_p10, %p446_p9 }
 0x151   :  { %454 = shalt.err (!%p451_p11)
}
 0x152   :  { %271 = dma.vmem_to_hbm [thread:$0]  %s266_s14, 256, %s576_s4, [#allocation4], %s471_s2, %s471_s2, %s472_s12  }
 0x153   :  { %461 = dma.done.wait [#allocation4], 256  }
 0x154   :  { %462 = vsyncadd [#allocation4], 4294967040 }
 0x155   :  { %275 = vsyncpa [#allocation3], 1 }
 0x156   :  { %276 = vsyncpa [#allocation6], 1 }
 0x157   :  { %277 = vsyncpa [#allocation9], 1 }
 0x158   :  { %278 = vsyncpa [#allocation4], 1 }

</bundles_post_ra>
